<compile_context>
chip_gen: v6e
topology: v6e:2x2x1
jax: 0.10.0
libtpu: 0.0.40
codegen_flags: <defaults>
</compile_context>

<pallas_src>
import functools
import numpy as np
import jax
import jax.numpy as jnp
from jax.experimental import pallas as pl
from jax.experimental.pallas import tpu as pltpu


def _round_up(x, m):
    return ((x + m - 1) // m) * m


# ---------------------------------------------------------------------------
# Pallas kernels
# ---------------------------------------------------------------------------
def _matmul_bias_kernel(a_ref, b_ref, bias_ref, o_ref, acc_ref, *, relu):
    """o = a @ b + bias (+ReLU). f32 scratch accumulator, bf16 output written at last k."""
    k = pl.program_id(2)
    d = jnp.dot(a_ref[...], b_ref[...], preferred_element_type=jnp.float32)

    @pl.when(k == 0)
    def _():
        acc_ref[...] = d                      # no zero-fill + add

    @pl.when(k > 0)
    def _():
        acc_ref[...] += d

    @pl.when(k == pl.num_programs(2) - 1)
    def _():
        r = acc_ref[...] + bias_ref[...]
        if relu:
            r = jnp.maximum(r, 0.0)
        o_ref[...] = r.astype(o_ref.dtype)


def _matmul_bias_res_kernel(a_ref, b_ref, bias_ref, res_ref, o_ref, acc_ref):
    """o = relu(a @ b + bias + residual). bf16 residual seeds the f32 accumulator at k==0."""
    k = pl.program_id(2)
    d = jnp.dot(a_ref[...], b_ref[...], preferred_element_type=jnp.float32)

    @pl.when(k == 0)
    def _():
        acc_ref[...] = res_ref[...].astype(jnp.float32) + d

    @pl.when(k > 0)
    def _():
        acc_ref[...] += d

    @pl.when(k == pl.num_programs(2) - 1)
    def _():
        o_ref[...] = jnp.maximum(acc_ref[...] + bias_ref[...], 0.0).astype(o_ref.dtype)


@functools.lru_cache(maxsize=None)
def _matmul_call(M, K, N, tm, tn, tk, relu, has_residual):
    if has_residual:
        kernel = _matmul_bias_res_kernel
        in_specs = [
            pl.BlockSpec((tm, tk), lambda i, j, k: (i, k)),
            pl.BlockSpec((tk, tn), lambda i, j, k: (k, j)),
            pl.BlockSpec((1, tn), lambda i, j, k: (0, j)),
            pl.BlockSpec((tm, tn), lambda i, j, k: (i, j)),   # residual, fetched once per (i,j)
        ]
    else:
        kernel = functools.partial(_matmul_bias_kernel, relu=relu)
        in_specs = [
            pl.BlockSpec((tm, tk), lambda i, j, k: (i, k)),
            pl.BlockSpec((tk, tn), lambda i, j, k: (k, j)),
            pl.BlockSpec((1, tn), lambda i, j, k: (0, j)),
        ]
    return pl.pallas_call(
        kernel,
        out_shape=jax.ShapeDtypeStruct((M, N), jnp.bfloat16),
        grid_spec=pltpu.PrefetchScalarGridSpec(
            num_scalar_prefetch=0,
            grid=(M // tm, N // tn, K // tk),
            in_specs=in_specs,
            out_specs=pl.BlockSpec((tm, tn), lambda i, j, k: (i, j)),
            scratch_shapes=[pltpu.VMEM((tm, tn), jnp.float32)],
        ),
        compiler_params=pltpu.CompilerParams(
            dimension_semantics=("parallel", "parallel", "arbitrary"),
            vmem_limit_bytes=32 * 1024 * 1024),
    )


def _pick_tiles(M, K, N):
    tm = min(512, _round_up(M, 8))
    Mp = _round_up(M, tm)
    Np = _round_up(N, 128)
    tn = next(t for t in (512, 256, 128) if Np % t == 0)
    # v7x has 2 TensorCores sharded over the "parallel" axes: keep >= 2 (i, j) tiles.
    if (Mp // tm) * (Np // tn) < 2:
        smaller_tn = next((t for t in (256, 128) if Np % t == 0 and Np // t >= 2), None)
        if smaller_tn is not None:
            tn = smaller_tn
        elif Mp >= 16:
            tm = _round_up(Mp // 2, 8)
            Mp = _round_up(M, tm)
    Kp = _round_up(K, 128)
    tk = next(t for t in (1024, 512, 256, 128) if Kp % t == 0)
    return Mp, Kp, Np, tm, tn, tk


def matmul_bias(a, b, bias, relu=False, residual=None):
    """out(bf16) = a @ b + bias (+ residual) (+ ReLU); bf16 MXU operands, f32 accumulation."""
    M, K = a.shape
    _, N = b.shape
    Mp, Kp, Np, tm, tn, tk = _pick_tiles(M, K, N)

    a_p = jnp.pad(a.astype(jnp.bfloat16), ((0, Mp - M), (0, Kp - K)))
    b_p = jnp.pad(b.astype(jnp.bfloat16), ((0, Kp - K), (0, Np - N)))
    bias_p = jnp.pad(bias.astype(jnp.float32), (0, Np - N)).reshape(1, Np)

    if residual is None:
        out = _matmul_call(Mp, Kp, Np, tm, tn, tk, bool(relu), False)(a_p, b_p, bias_p)
    else:
        r_p = jnp.pad(residual.astype(jnp.bfloat16), ((0, Mp - M), (0, Np - N)))
        out = _matmul_call(Mp, Kp, Np, tm, tn, tk, True, True)(a_p, b_p, bias_p, r_p)
    return out[:M, :N]


def _softmax_c_kernel(x_ref, o_ref):
    # x_ref: (1, C, tile_l) -- softmax over the small channel/sublane axis; the spatial axis
    # sits on lanes so loads/stores are lane-dense.
    x = x_ref[...]
    m = jnp.max(x, axis=1, keepdims=True)
    e = jnp.exp(x - m)
    o_ref[...] = e / jnp.sum(e, axis=1, keepdims=True)


@functools.lru_cache(maxsize=None)
def _softmax_call(N, C, L, tl):
    return pl.pallas_call(
        _softmax_c_kernel,
        out_shape=jax.ShapeDtypeStruct((N, C, L), jnp.float32),
        grid_spec=pltpu.PrefetchScalarGridSpec(
            num_scalar_prefetch=0,
            grid=(N, L // tl),
            in_specs=[pl.BlockSpec((1, C, tl), lambda b, l: (b, 0, l))],
            out_specs=pl.BlockSpec((1, C, tl), lambda b, l: (b, 0, l)),
        ),
        compiler_params=pltpu.CompilerParams(
            dimension_semantics=("parallel", "parallel")),
    )


def softmax_channels_nchw(x):
    """Softmax over dim=1 of an NCHW tensor (f32) via the lane-dense Pallas kernel."""
    n, c, h, w = x.shape
    L = h * w
    tl = min(_round_up(L, 128), 8192)        # large lane-dense tiles amortize step overhead
    Lp = _round_up(L, tl)
    xf = jnp.pad(x.reshape(n, c, L), ((0, 0), (0, 0), (0, Lp - L)))
    out = _softmax_call(n, c, Lp, tl)(xf)
    return out[:, :, :L].reshape(n, c, h, w)


# ---------------------------------------------------------------------------
# Conv / pool wrappers (im2col glue in JAX -- fused by the block-level jit -- matmul in Pallas)
# ---------------------------------------------------------------------------
def conv2d(x, w, b, stride=1, padding=0, dilation=1, relu=False, residual=None):
    """x: (N,H,W,Cin) NHWC; w: (kh,kw,Cin,Cout); b: (Cout,); optional fused residual+ReLU."""
    n, h, wd, cin = x.shape
    kh, kw, _, cout = w.shape
    hp, wp = h + 2 * padding, wd + 2 * padding
    hout = (hp - dilation * (kh - 1) - 1) // stride + 1
    wout = (wp - dilation * (kw - 1) - 1) // stride + 1

    x16 = x.astype(jnp.bfloat16)
    xpad = (jnp.pad(x16, ((0, 0), (padding, padding), (padding, padding), (0, 0)))
            if padding else x16)

    cols, w_slabs = [], []
    for ky in range(kh):
        for kx in range(kw):
            ys, xs = ky * dilation, kx * dilation
            y_hi = ys + stride * (hout - 1)
            x_hi = xs + stride * (wout - 1)
            # Drop taps that read only zero padding (exact; big win for ASPP rates 12/24/36).
            if padding and (y_hi < padding or ys >= padding + h or
                            x_hi < padding or xs >= padding + wd):
                continue
            cols.append(xpad[:, ys:ys + stride * (hout - 1) + 1:stride,
                             xs:xs + stride * (wout - 1) + 1:stride, :])
            w_slabs.append(w[ky, kx])
    a = jnp.concatenate(cols, axis=-1).reshape(n * hout * wout, len(cols) * cin)
    bmat = jnp.concatenate(w_slabs, axis=0).astype(jnp.bfloat16)

    res_flat = None
    if residual is not None:
        res_flat = residual.reshape(n * hout * wout, cout)

    out = matmul_bias(a, bmat, b, relu=relu, residual=res_flat)
    return out.reshape(n, hout, wout, cout)


def maxpool_3x3_s2(x):
    """3x3/stride-2/pad-1 max pool as a pairwise-max tree (bf16, fused by the jit)."""
    n, h, w, c = x.shape
    hout = (h + 2 - 3) // 2 + 1
    wout = (w + 2 - 3) // 2 + 1
    xpad = jnp.pad(x, ((0, 0), (1, 1), (1, 1), (0, 0)),
                   constant_values=float("-inf"))
    out = None
    for ky in range(3):
        for kx in range(3):
            tap = xpad[:, ky:ky + 2 * (hout - 1) + 1:2,
                       kx:kx + 2 * (wout - 1) + 1:2, :]
            out = tap if out is None else jnp.maximum(out, tap)
    return out


# ---------------------------------------------------------------------------
# Deterministic synthetic parameters (BN folded into convs, eval-mode)
# ---------------------------------------------------------------------------
class KeyGen:
    def __init__(self, seed):
        self._key = jax.random.PRNGKey(seed)
        self._i = 0

    def __call__(self):
        self._i += 1
        return jax.random.fold_in(self._key, self._i)


def conv_bn_params(kg, cin, cout, k):
    fan_in = cin * k * k
    w = jax.random.normal(kg(), (k, k, cin, cout), jnp.float32) * np.sqrt(2.0 / fan_in)
    gamma = jax.random.uniform(kg(), (cout,), minval=0.5, maxval=1.5)
    beta = jax.random.normal(kg(), (cout,), jnp.float32) * 0.1
    mean = jax.random.normal(kg(), (cout,), jnp.float32) * 0.1
    var = jax.random.uniform(kg(), (cout,), minval=0.5, maxval=1.5)
    scale = gamma / jnp.sqrt(var + 1e-5)
    return w * scale, beta - mean * scale


def conv_params(kg, cin, cout, k, bias=True):
    fan_in = cin * k * k
    w = jax.random.normal(kg(), (k, k, cin, cout), jnp.float32) * np.sqrt(2.0 / fan_in)
    b = (jax.random.normal(kg(), (cout,), jnp.float32) * 0.01) if bias \
        else jnp.zeros((cout,), jnp.float32)
    return w, b


def bottleneck_params(kg, inplanes, planes, stride, dilation, downsample):
    p = {
        "c1": conv_bn_params(kg, inplanes, planes, 1),
        "c2": conv_bn_params(kg, planes, planes, 3),
        "c3": conv_bn_params(kg, planes, planes * 4, 1),
        "stride": stride,
        "dilation": dilation,
    }
    if downsample:
        p["ds"] = conv_bn_params(kg, inplanes, planes * 4, 1)
    return p


def make_layer(kg, inplanes, planes, blocks, stride, dilate, dilation):
    previous_dilation = dilation
    if dilate:                       # deeplab: replace stride with dilation
        dilation = dilation * stride
        stride = 1
    downsample = (stride != 1) or (inplanes != planes * 4)
    params = [bottleneck_params(kg, inplanes, planes, stride, previous_dilation, downsample)]
    inplanes = planes * 4
    for _ in range(blocks - 1):
        params.append(bottleneck_params(kg, inplanes, planes, 1, dilation, False))
    return params, inplanes, dilation


def init_params(seed=0):
    kg = KeyGen(seed)
    p = {"stem": conv_bn_params(kg, 3, 64, 7)}
    inplanes, dilation = 64, 1
    p["layer1"], inplanes, dilation = make_layer(kg, inplanes, 64, 3, 1, False, dilation)
    p["layer2"], inplanes, dilation = make_layer(kg, inplanes, 128, 4, 2, False, dilation)
    p["layer3"], inplanes, dilation = make_layer(kg, inplanes, 256, 23, 2, True, dilation)
    p["layer4"], inplanes, dilation = make_layer(kg, inplanes, 512, 3, 2, True, dilation)
    p["aspp"] = {
        "b0": conv_bn_params(kg, 2048, 256, 1),
        "b1": conv_bn_params(kg, 2048, 256, 3),   # rate 12
        "b2": conv_bn_params(kg, 2048, 256, 3),   # rate 24
        "b3": conv_bn_params(kg, 2048, 256, 3),   # rate 36
        "pool": conv_bn_params(kg, 2048, 256, 1),
        "project": conv_bn_params(kg, 1280, 256, 1),
    }
    p["head_conv"] = conv_bn_params(kg, 256, 256, 3)
    p["head_final"] = conv_params(kg, 256, 3, 1, bias=True)   # replaced classifier[4]
    # aux_classifier exists in the torch module but Net.forward only uses x['out'];
    # it is never computed here.
    return p


# ---------------------------------------------------------------------------
# Model forward (block-level jitted sub-graphs; ~12 unique compiles reused 33+ times)
# ---------------------------------------------------------------------------
@jax.jit
def _stem_fwd(img_nchw, w, b):
    x = jnp.transpose(img_nchw, (0, 2, 3, 1)).astype(jnp.bfloat16)   # NCHW -> NHWC
    x = conv2d(x, w, b, stride=2, padding=3, relu=True)
    return maxpool_3x3_s2(x)


@functools.partial(jax.jit, static_argnames=("stride", "dilation"))
def _bottleneck_fwd(x, c1, c2, c3, ds, *, stride, dilation):
    out = conv2d(x, *c1, relu=True)
    out = conv2d(out, *c2, stride=stride, padding=dilation, dilation=dilation, relu=True)
    identity = conv2d(x, *ds, stride=stride) if ds is not None else x
    # c3 1x1 conv with residual add + ReLU fused into the matmul epilogue.
    return conv2d(out, *c3, residual=identity)


@jax.jit
def _aspp_fwd(x, p):
    n, h, w, _ = x.shape
    r0 = conv2d(x, *p["b0"], relu=True)
    r1 = conv2d(x, *p["b1"], padding=12, dilation=12, relu=True)
    r2 = conv2d(x, *p["b2"], padding=24, dilation=24, relu=True)
    r3 = conv2d(x, *p["b3"], padding=36, dilation=36, relu=True)
    gp = jnp.mean(x.astype(jnp.float32), axis=(1, 2), keepdims=True)   # global avg pool (glue)
    gp = conv2d(gp, *p["pool"], relu=True)
    gp = jnp.broadcast_to(gp, (n, h, w, 256))
    cat = jnp.concatenate([r0, r1, r2, r3, gp], axis=-1)
    # Dropout(0.5) is identity in eval mode.
    return conv2d(cat, *p["project"], relu=True)


def _interp_matrix(out_size, in_size):
    # PyTorch bilinear, align_corners=False.  (numpy at trace time -> constants under jit)
    i = np.arange(out_size)
    src = np.maximum((i + 0.5) * (in_size / out_size) - 0.5, 0.0)
    i0 = np.minimum(np.floor(src).astype(np.int64), in_size - 1)
    i1 = np.minimum(i0 + 1, in_size - 1)
    lam = src - i0
    W = np.zeros((out_size, in_size), np.float32)
    W[np.arange(out_size), i0] += (1.0 - lam)
    W[np.arange(out_size), i1] += lam
    return jnp.asarray(W)


@functools.partial(jax.jit, static_argnames=("out_h", "out_w"))
def _head_fwd(x, head_conv, head_final, *, out_h, out_w):
    x = conv2d(x, *head_conv, padding=1, relu=True)
    x = conv2d(x, *head_final)                                       # (n, h/8, w/8, 3)
    x = jnp.transpose(x, (0, 3, 1, 2)).astype(jnp.float32)           # (n, 3, h/8, w/8)
    wh = _interp_matrix(out_h, x.shape[2])
    ww = _interp_matrix(out_w, x.shape[3])
    x = jnp.einsum("Oh,nchw->ncOw", wh, x)                           # bilinear upsample
    x = jnp.einsum("Pw,nchw->nchP", ww, x)                           # (n, 3, H, W)
    return softmax_channels_nchw(x)                                  # channel softmax (dim=1)


def net_forward(img_nchw, params):
    # ResNet-101 backbone (output_stride 8: layer3/layer4 dilated).
    x = _stem_fwd(img_nchw, *params["stem"])
    for layer in ("layer1", "layer2", "layer3", "layer4"):
        for bp in params[layer]:
            x = _bottleneck_fwd(x, bp["c1"], bp["c2"], bp["c3"], bp.get("ds"),
                                stride=bp["stride"], dilation=bp["dilation"])
    # DeepLab head: ASPP -> 3x3 conv + BN + ReLU -> 1x1 conv to 3 classes -> upsample -> softmax.
    x = _aspp_fwd(x, params["aspp"])
    return _head_fwd(x, params["head_conv"], params["head_final"],
                     out_h=img_nchw.shape[2], out_w=img_nchw.shape[3])   # NCHW probabilities


if __name__ == "__main__":
    key = jax.random.PRNGKey(0)
    img = jax.random.normal(key, (2, 3, 32, 32), jnp.float32)   # small NCHW RGB batch
    params = init_params(seed=0)
    out = jax.block_until_ready(net_forward(img, params))
    assert out.shape == (2, 3, 32, 32)
    sums = jax.block_until_ready(jnp.sum(out, axis=1))
    assert bool(jnp.allclose(sums, 1.0, atol=1e-4))
    print("KERNEL_OK")
</pallas_src>

<mosaic_0001>
module attributes {stable_mosaic.version = 11 : i64} {
  func.func @_matmul_bias_kernel(%arg0: i32, %arg1: i32, %arg2: i32, %arg3: memref<256x256xbf16, #tpu.memory_space<vmem>>, %arg4: memref<256x128xbf16, #tpu.memory_space<vmem>>, %arg5: memref<1x128xf32, #tpu.memory_space<vmem>>, %arg6: memref<256x128xbf16, #tpu.memory_space<vmem>>, %arg7: memref<256x128xf32, #tpu.memory_space<vmem>>) attributes {dimension_semantics = [#tpu.dimension_semantics<parallel>, #tpu.dimension_semantics<parallel>, #tpu.dimension_semantics<arbitrary>], iteration_bounds = array<i64: 2, 1, 1>, scalar_prefetch = 0 : i64, scratch_operands = 1 : i64, tpu.core_type = #tpu.core_type<tc>, window_params = [{transform_indices = @transform_0, window_bounds = array<i64: 256, 256>}, {transform_indices = @transform_1, window_bounds = array<i64: 256, 128>}, {transform_indices = @transform_2, window_bounds = array<i64: 1, 128>}, {transform_indices = @transform_3, window_bounds = array<i64: 256, 128>}]} {
    %c0 = arith.constant 0 : index
    %c0_0 = arith.constant 0 : index
    %0 = vector.load %arg3[%c0, %c0_0] : memref<256x256xbf16, #tpu.memory_space<vmem>>, vector<256x256xbf16>
    %c0_1 = arith.constant 0 : index
    %c0_2 = arith.constant 0 : index
    %1 = vector.load %arg4[%c0_1, %c0_2] : memref<256x128xbf16, #tpu.memory_space<vmem>>, vector<256x128xbf16>
    %cst = arith.constant dense<0.000000e+00> : vector<256x128xf32>
    %2 = tpu.matmul %0, %1, %cst {dimension_numbers = #tpu.dot_dimension_numbers<[1], [0], [0], [1], [0, 0, 1, 1], [], []>} : vector<256x256xbf16>, vector<256x128xbf16>, vector<256x128xf32> -> vector<256x128xf32>
    %c0_i32 = arith.constant 0 : i32
    %3 = arith.cmpi eq, %arg2, %c0_i32 : i32
    %4 = arith.extui %3 : i1 to i32
    %c0_i32_3 = arith.constant 0 : i32
    %5 = arith.cmpi ne, %4, %c0_i32_3 : i32
    scf.if %5 {
      %c0_8 = arith.constant 0 : index
      %c0_9 = arith.constant 0 : index
      %12 = vector.load %arg7[%c0_8, %c0_9] : memref<256x128xf32, #tpu.memory_space<vmem>>, vector<256x128xf32>
      tpu.vector_store %arg7[%c0_8, %c0_9], %2 {strides = array<i32>} : memref<256x128xf32, #tpu.memory_space<vmem>>, vector<256x128xf32>,
    } else {
    }
    %c0_i32_4 = arith.constant 0 : i32
    %6 = arith.cmpi sgt, %arg2, %c0_i32_4 : i32
    %7 = arith.extui %6 : i1 to i32
    %c0_i32_5 = arith.constant 0 : i32
    %8 = arith.cmpi ne, %7, %c0_i32_5 : i32
    scf.if %8 {
      %c0_8 = arith.constant 0 : index
      %c0_9 = arith.constant 0 : index
      %12 = vector.load %arg7[%c0_8, %c0_9] : memref<256x128xf32, #tpu.memory_space<vmem>>, vector<256x128xf32>
      %13 = arith.addf %12, %2 : vector<256x128xf32>
      %c0_10 = arith.constant 0 : index
      %c0_11 = arith.constant 0 : index
      %14 = vector.load %arg7[%c0_10, %c0_11] : memref<256x128xf32, #tpu.memory_space<vmem>>, vector<256x128xf32>
      tpu.vector_store %arg7[%c0_10, %c0_11], %13 {strides = array<i32>} : memref<256x128xf32, #tpu.memory_space<vmem>>, vector<256x128xf32>,
    } else {
    }
    %c0_i32_6 = arith.constant 0 : i32
    %9 = arith.cmpi eq, %arg2, %c0_i32_6 : i32
    %10 = arith.extui %9 : i1 to i32
    %c0_i32_7 = arith.constant 0 : i32
    %11 = arith.cmpi ne, %10, %c0_i32_7 : i32
    scf.if %11 {
      %c0_8 = arith.constant 0 : index
      %c0_9 = arith.constant 0 : index
      %12 = vector.load %arg7[%c0_8, %c0_9] : memref<256x128xf32, #tpu.memory_space<vmem>>, vector<256x128xf32>
      %c0_10 = arith.constant 0 : index
      %c0_11 = arith.constant 0 : index
      %13 = vector.load %arg5[%c0_10, %c0_11] : memref<1x128xf32, #tpu.memory_space<vmem>>, vector<1x128xf32>
      %14 = vector.broadcast %13 : vector<1x128xf32> to vector<256x128xf32>
      %15 = arith.addf %12, %14 : vector<256x128xf32>
      %cst_12 = arith.constant 0.000000e+00 : f32
      %16 = vector.broadcast %cst_12 : f32 to vector<256x128xf32>
      %17 = arith.maximumf %15, %16 : vector<256x128xf32>
      %18 = arith.truncf %17 : vector<256x128xf32> to vector<256x128xbf16>
      %c0_13 = arith.constant 0 : index
      %c0_14 = arith.constant 0 : index
      %19 = vector.load %arg6[%c0_13, %c0_14] : memref<256x128xbf16, #tpu.memory_space<vmem>>, vector<256x128xbf16>
      tpu.vector_store %arg6[%c0_13, %c0_14], %18 {strides = array<i32>} : memref<256x128xbf16, #tpu.memory_space<vmem>>, vector<256x128xbf16>,
    } else {
    }
    return
  }
  func.func @transform_0(%arg0: i32, %arg1: i32, %arg2: i32) -> (i32, i32) {
    %c0_i32 = arith.constant 0 : i32
    return %arg0, %arg2 : i32, i32
  }
  func.func @transform_1(%arg0: i32, %arg1: i32, %arg2: i32) -> (i32, i32) {
    %c0_i32 = arith.constant 0 : i32
    return %arg2, %arg1 : i32, i32
  }
  func.func @transform_2(%arg0: i32, %arg1: i32, %arg2: i32) -> (i32, i32) {
    %c0_i32 = arith.constant 0 : i32
    %c0_i32_0 = arith.constant 0 : i32
    return %c0_i32, %arg1 : i32, i32
  }
  func.func @transform_3(%arg0: i32, %arg1: i32, %arg2: i32) -> (i32, i32) {
    %c0_i32 = arith.constant 0 : i32
    return %arg0, %arg1 : i32, i32
  }
}

</mosaic_0001>

<bundles_post_ra>
// kernel: _stem_fwd.1
= control target key start
LH: loop header
LB: loop body
LE: loop exit
PB: predicated region body
PF: predicated region fallthrough
CT: control target
= control target key end

     0   :  { %s1748_s12 = smov 0   ;;  %s1750_s13 = smov 0   ;;  %s1922_s0 = inlined_call_operand.vmem [shape: bf16[512,256], index: 0, kind: input, shape index: {}]   ;;  %s1923_s1 = inlined_call_operand.vmem [shape: bf16[256,128], index: 1, kind: input, shape index: {}]   ;;  %s1924_s2 = inlined_call_operand.vmem [shape: f32[1,128], index: 2, kind: input, shape index: {}]   ;;  %s1925_s3 = inlined_call_operand.vmem [shape: bf16[512,128], index: 3, kind: output, shape index: {}]  }
   0x1   :  { %s1752_s14 = smov 0  }
   0x2 LB: > { %s32_s15 = sadd.s32 1, %s1722_s13  ;;  %p1271_p0 = scmp.ge.s32.totalorder %s1726_s14, 1  ;;  %s1726_s14 = sphi %s1752_s14, %s13_s14   ;;  %s1722_s13 = sphi %s1750_s13, %s1927_s13   ;;  %s1718_s12 = sphi %s1748_s12, %s1926_s12  }
   0x3   : > { %p34_p1 = scmp.ge.s32.totalorder %s32_s15, 2  ;;  %p191_p2 = scmp.lt.s32.totalorder %s1726_s14, 3 }
   0x5   : > { %s1929_s15 = smov (%p34_p1, %s32_s15), 0  ;;  %p192_p3 = pnand %p1271_p0, %p191_p2 }
   0x6   : > { %s1272_s18 = sshll.u32 (!%p192_p3), %s1718_s12, 5 }
   0x7   : > { %195 = sbr.rel (%p192_p3) target bundleno = 309 (0x135), region = 32  ;;  %p236_p4 = scmp.lt.s32.totalorder (!%p192_p3), %s1272_s18, 63 }
   0xc   : > { %v1640_v0 = vld [vmem:[%s1923_s1 + $0x78] sm:$0xff]   ;;  %v1642_v2 = vld [vmem:[%s1923_s1 + $0x70] sm:$0xff]   ;;  %v1644_v4 = vld [vmem:[%s1923_s1 + $0x68] sm:$0xff]   ;;  %s1931_s18 = smov (!%p236_p4, %s1272_s18), 63 }
   0xd   : > { %v1641_v1 = vld [vmem:[%s1923_s1 + $0x38] sm:$0xff]   ;;  %1488 = vmatprep.subr.bf16.mxu0 %v1640_v0  ;;  %1600 = vmatprep.subr.bf16.mxu1 %v1640_v0  ;;  %v1643_v3 = vld [vmem:[%s1923_s1 + $0x30] sm:$0xff]   ;;  %v1645_v5 = vld [vmem:[%s1923_s1 + $0x28] sm:$0xff]   ;;  %s1360_s6 = sshll.u32 %s1931_s18, 3  ;;  %s1276_s5 = sshll.u32 %s1931_s18, 2 }
   0xe   : > { %1489 = vmatpush3.bf16.msra.mxu0 %v1641_v1  ;;  %1608 = vmatpush3.bf16.msra.mxu1 %v1641_v1  ;;  %v1646_v6 = vld [vmem:[%s1923_s1 + $0x60] sm:$0xff]   ;;  %v1648_v8 = vld [vmem:[%s1923_s1 + $0x58] sm:$0xff]   ;;  %s1799_s11 = scalar_lea.vmem %s1922_s0, %s1360_s6  ;;  %v1650_v10 = vld [vmem:[%s1923_s1 + $0x50] sm:$0xff]   ;;  %s1867_s8 = scalar_lea.vmem %s1925_s3, %s1276_s5 }
   0xf   : > { %1490 = vmatprep.subr.bf16.mxu0 %v1642_v2  ;;  %1601 = vmatprep.subr.bf16.mxu1 %v1642_v2  ;;  %v1647_v7 = vld [vmem:[%s1923_s1 + $0x20] sm:$0xff]   ;;  %v1649_v9 = vld [vmem:[%s1923_s1 + $0x18] sm:$0xff]   ;;  %v1651_v13 = vld [vmem:[%s1923_s1 + $0x10] sm:$0xff]  }
  0x10   : > { %v1658_v11 = vld [vmem:[%s1799_s11 + $0x4] ss:$8 sps:$4 sm:$0xff]   ;;  %v1656_v18 = vld [vmem:[%s1799_s11] ss:$8 sps:$4 sm:$0xff]   ;;  %v1662_v20 = vld [vmem:[%s1799_s11 + $0x14] ss:$8 sps:$4 sm:$0xff]  }
  0x11   : > { %v1661_v12 = vld [vmem:[%s1799_s11 + $0x84] ss:$8 sps:$4 sm:$0xff]   ;;  %620 = vmatprep.mubr.bf16.mxu0 %v1658_v11  ;;  %v1659_v19 = vld [vmem:[%s1799_s11 + $0x80] ss:$8 sps:$4 sm:$0xff]   ;;  %v1664_v21 = vld [vmem:[%s1799_s11 + $0x94] ss:$8 sps:$4 sm:$0xff]  }
  0x12   : > { %1491 = vmatpush3.bf16.msra.mxu0 %v1643_v3  ;;  %1609 = vmatpush3.bf16.msra.mxu1 %v1643_v3  ;;  %v1652_v14 = vld [vmem:[%s1923_s1 + $0x48] sm:$0xff]   ;;  %v1654_v16 = vld [vmem:[%s1923_s1 + $0x40] sm:$0xff]   ;;  %v1666_v22 = vld [vmem:[%s1799_s11 + $0x10] ss:$8 sps:$4 sm:$0xff]  }
  0x13   : > { %1492 = vmatprep.subr.bf16.mxu0 %v1644_v4  ;;  %1602 = vmatprep.subr.bf16.mxu1 %v1644_v4  ;;  %v1653_v15 = vld [vmem:[%s1923_s1 + $0x8] sm:$0xff]   ;;  %v1655_v17 = vld [vmem:[%s1923_s1] sm:$0xff]   ;;  %v1667_v23 = vld [vmem:[%s1799_s11 + $0x90] ss:$8 sps:$4 sm:$0xff]  }
  0x14   : > { %684 = vmatprep.mubr.bf16.mxu1 %v1661_v12  ;;  %v1668_v24 = vld [vmem:[%s1799_s11 + $0x24] ss:$8 sps:$4 sm:$0xff]   ;;  %v1672_v26 = vld [vmem:[%s1799_s11 + $0x20] ss:$8 sps:$4 sm:$0xff]   ;;  %v1674_v28 = vld [vmem:[%s1799_s11 + $0x34] ss:$8 sps:$4 sm:$0xff]  }
  0x15   : > { %v1670_v25 = vld [vmem:[%s1799_s11 + $0xa4] ss:$8 sps:$4 sm:$0xff]   ;;  %v1673_v27 = vld [vmem:[%s1799_s11 + $0xa0] ss:$8 sps:$4 sm:$0xff]   ;;  %v1676_v29 = vld [vmem:[%s1799_s11 + $0xb4] ss:$8 sps:$4 sm:$0xff]  }
  0x16   : > { %1493 = vmatpush3.bf16.msra.mxu0 %v1645_v5  ;;  %1610 = vmatpush3.bf16.msra.mxu1 %v1645_v5  ;;  %v1678_v30 = vld [vmem:[%s1799_s11 + $0x30] ss:$8 sps:$4 sm:$0xff]   ;;  %v1680_v32 = vld [vmem:[%s1799_s11 + $0x44] ss:$8 sps:$4 sm:$0xff]   ;;  %v1684_v34 = vld [vmem:[%s1799_s11 + $0x40] ss:$8 sps:$4 sm:$0xff]  }
  0x17   : > { %1494 = vmatprep.subr.bf16.mxu0 %v1646_v6  ;;  %1603 = vmatprep.subr.bf16.mxu1 %v1646_v6  ;;  %v1679_v31 = vld [vmem:[%s1799_s11 + $0xb0] ss:$8 sps:$4 sm:$0xff]   ;;  %v1682_v33 = vld [vmem:[%s1799_s11 + $0xc4] ss:$8 sps:$4 sm:$0xff]   ;;  %v1685_v35 = vld [vmem:[%s1799_s11 + $0xc0] ss:$8 sps:$4 sm:$0xff]  }
  0x18   : > { %v1686_v36 = vld [vmem:[%s1799_s11 + $0x54] ss:$8 sps:$4 sm:$0xff]   ;;  %v1690_v38 = vld [vmem:[%s1799_s11 + $0x50] ss:$8 sps:$4 sm:$0xff]   ;;  %v1692_v40 = vld [vmem:[%s1799_s11 + $0x64] ss:$8 sps:$4 sm:$0xff]  }
  0x19   : > { %v1688_v37 = vld [vmem:[%s1799_s11 + $0xd4] ss:$8 sps:$4 sm:$0xff]   ;;  %v1691_v39 = vld [vmem:[%s1799_s11 + $0xd0] ss:$8 sps:$4 sm:$0xff]   ;;  %v1694_v41 = vld [vmem:[%s1799_s11 + $0xe4] ss:$8 sps:$4 sm:$0xff]  }
  0x1a   : > { %1495 = vmatpush3.bf16.msra.mxu0 %v1647_v7  ;;  %1611 = vmatpush3.bf16.msra.mxu1 %v1647_v7  ;;  %v1696_v42 = vld [vmem:[%s1799_s11 + $0x60] ss:$8 sps:$4 sm:$0xff]   ;;  %v1698_v44 = vld [vmem:[%s1799_s11 + $0x74] ss:$8 sps:$4 sm:$0xff]   ;;  %v1702_v46 = vld [vmem:[%s1799_s11 + $0x70] ss:$8 sps:$4 sm:$0xff]  }
  0x1b   : > { %1496 = vmatprep.subr.bf16.mxu0 %v1648_v8  ;;  %1604 = vmatprep.subr.bf16.mxu1 %v1648_v8  ;;  %v1697_v43 = vld [vmem:[%s1799_s11 + $0xe0] ss:$8 sps:$4 sm:$0xff]   ;;  %v1700_v45 = vld [vmem:[%s1799_s11 + $0xf4] ss:$8 sps:$4 sm:$0xff]   ;;  %v1703_v47 = vld [vmem:[%s1799_s11 + $0xf0] ss:$8 sps:$4 sm:$0xff]  }
  0x1c   : > { %v1857_v53 = vld [vmem:[%s1924_s2] ss:$0 sm:$0xff] }
  0x1e   : > { %1497 = vmatpush3.bf16.msra.mxu0 %v1649_v9  ;;  %1612 = vmatpush3.bf16.msra.mxu1 %v1649_v9 }
  0x1f   : > { %1498 = vmatprep.subr.bf16.mxu0 %v1650_v10  ;;  %1605 = vmatprep.subr.bf16.mxu1 %v1650_v10 }
  0x22   : > { %1499 = vmatpush3.bf16.msra.mxu0 %v1651_v13  ;;  %1613 = vmatpush3.bf16.msra.mxu1 %v1651_v13 }
  0x23   : > { %1500 = vmatprep.subr.bf16.mxu0 %v1652_v14  ;;  %1606 = vmatprep.subr.bf16.mxu1 %v1652_v14 }
  0x26   : > { %1501 = vmatpush3.bf16.msra.mxu0 %v1653_v15  ;;  %1614 = vmatpush3.bf16.msra.mxu1 %v1653_v15 }
  0x27   : > { %1502 = vmatprep.subr.bf16.mxu0 %v1654_v16  ;;  %1607 = vmatprep.subr.bf16.mxu1 %v1654_v16 }
  0x2a   : > { %1503 = vmatpush3.bf16.msra.mxu0 %v1655_v17  ;;  %1615 = vmatpush3.bf16.msra.mxu1 %v1655_v17 }
  0x2d   : > { %621 = vmatmul.mubr.bf16.vlgmr.msra.gmra.mxu0 %v1656_v18  ;;  %685 = vmatmul.mubr.bf16.vlgmr.msra.gmra.mxu1 %v1659_v19 }
  0x2e   : > { %628 = vmatprep.mubr.bf16.mxu0 %v1662_v20  ;;  %692 = vmatprep.mubr.bf16.mxu1 %v1664_v21 }
  0x35   : > { %629 = vmatmul.mubr.bf16.gmra.mxu0 %v1666_v22  ;;  %693 = vmatmul.mubr.bf16.gmra.mxu1 %v1667_v23 }
  0x36   : > { %636 = vmatprep.mubr.bf16.mxu0 %v1668_v24  ;;  %700 = vmatprep.mubr.bf16.mxu1 %v1670_v25 }
  0x3d   : > { %637 = vmatmul.mubr.bf16.gmra.mxu0 %v1672_v26  ;;  %701 = vmatmul.mubr.bf16.gmra.mxu1 %v1673_v27 }
  0x3e   : > { %644 = vmatprep.mubr.bf16.mxu0 %v1674_v28  ;;  %708 = vmatprep.mubr.bf16.mxu1 %v1676_v29 }
  0x45   : > { %645 = vmatmul.mubr.bf16.gmra.mxu0 %v1678_v30  ;;  %709 = vmatmul.mubr.bf16.gmra.mxu1 %v1679_v31 }
  0x46   : > { %652 = vmatprep.mubr.bf16.mxu0 %v1680_v32  ;;  %716 = vmatprep.mubr.bf16.mxu1 %v1682_v33 }
  0x4d   : > { %653 = vmatmul.mubr.bf16.gmra.mxu0 %v1684_v34  ;;  %717 = vmatmul.mubr.bf16.gmra.mxu1 %v1685_v35 }
  0x4e   : > { %660 = vmatprep.mubr.bf16.mxu0 %v1686_v36  ;;  %724 = vmatprep.mubr.bf16.mxu1 %v1688_v37 }
  0x55   : > { %661 = vmatmul.mubr.bf16.gmra.mxu0 %v1690_v38  ;;  %725 = vmatmul.mubr.bf16.gmra.mxu1 %v1691_v39 }
  0x56   : > { %668 = vmatprep.mubr.bf16.mxu0 %v1692_v40  ;;  %732 = vmatprep.mubr.bf16.mxu1 %v1694_v41 }
  0x5d   : > { %669 = vmatmul.mubr.bf16.gmra.mxu0 %v1696_v42  ;;  %733 = vmatmul.mubr.bf16.gmra.mxu1 %v1697_v43 }
  0x5e   : > { %676 = vmatprep.mubr.bf16.mxu0 %v1698_v44  ;;  %740 = vmatprep.mubr.bf16.mxu1 %v1700_v45 }
  0x65   : > { %677 = vmatmul.mubr.bf16.gmra.mxu0 %v1702_v46  ;;  %741 = vmatmul.mubr.bf16.gmra.mxu1 %v1703_v47 }
  0xed   : > { %v1504_v48 = vpop.f32.mrf.mxu0  ;;  %v1552_v49 = vpop.f32.mrf.mxu1 }
  0xef   : > { %v1505_v50 = vpop.f32.mrf.mxu0  ;;  %v1553_v51 = vpop.f32.mrf.mxu1 }
  0xf0   : > { %v1506_v52 = vadd.f32 %v1505_v50, %v1504_v48  ;;  %v1554_v54 = vadd.f32 %v1553_v51, %v1552_v49 }
  0xf1   : > { %v1507_v55 = vpop.f32.mrf.mxu0  ;;  %v1555_v56 = vpop.f32.mrf.mxu1 }
  0xf2   : > { %v927_v57 = vadd.f32 %v1506_v52, %v1857_v53  ;;  %v943_v58 = vadd.f32 %v1554_v54, %v1857_v53 }
  0xf3   : > { %v1508_v59 = vpop.f32.mrf.mxu0  ;;  %v1556_v60 = vpop.f32.mrf.mxu1 }
  0xf4   : > { %v1509_v61 = vadd.f32 %v1508_v59, %v1507_v55  ;;  %v1557_v62 = vadd.f32 %v1556_v60, %v1555_v56  ;;  %v959_v3 = vmax.f32 %v927_v57, 0.0  ;;  %v975_v4 = vmax.f32 %v943_v58, 0.0 }
  0xf5   : > { %v1510_v63 = vpop.f32.mrf.mxu0  ;;  %v1558_v0 = vpop.f32.mrf.mxu1 }
  0xf6   : > { %v928_v1 = vadd.f32 %v1509_v61, %v1857_v53  ;;  %v944_v2 = vadd.f32 %v1557_v62, %v1857_v53 }
  0xf7   : > { %v1511_v5 = vpop.f32.mrf.mxu0  ;;  %v1559_v6 = vpop.f32.mrf.mxu1 }
  0xf8   : > { %v960_v7 = vmax.f32 %v928_v1, 0.0  ;;  %v976_v8 = vmax.f32 %v944_v2, 0.0  ;;  %v1512_v9 = vadd.f32 %v1511_v5, %v1510_v63  ;;  %v1560_v10 = vadd.f32 %v1559_v6, %v1558_v0 }
  0xf9   : > { %v1513_v11 = vpop.f32.mrf.mxu0  ;;  %v1561_v12 = vpop.f32.mrf.mxu1 }
  0xfa   : > { %v1396_v13 = vpack.c.bf16 %v960_v7, %v959_v3  ;;  %v1436_v14 = vpack.c.bf16 %v976_v8, %v975_v4  ;;  %v929_v15 = vadd.f32 %v1512_v9, %v1857_v53  ;;  %v945_v16 = vadd.f32 %v1560_v10, %v1857_v53 }
  0xfb   : > { %v1514_v17 = vpop.f32.mrf.mxu0  ;;  %v1562_v18 = vpop.f32.mrf.mxu1 }
  0xfc   : > { %1397 = vst [vmem:[%s1867_s8] sm:$0xff] %v1396_v13   ;;  %1480 = vst [vmem:[%s1867_s8 + $0x40] sm:$0xff] %v1436_v14   ;;  %v1515_v19 = vadd.f32 %v1514_v17, %v1513_v11  ;;  %v1563_v20 = vadd.f32 %v1562_v18, %v1561_v12  ;;  %v961_v25 = vmax.f32 %v929_v15, 0.0  ;;  %v977_v26 = vmax.f32 %v945_v16, 0.0 }
  0xfd   : > { %v1516_v21 = vpop.f32.mrf.mxu0  ;;  %v1564_v22 = vpop.f32.mrf.mxu1 }
  0xfe   : > { %v930_v23 = vadd.f32 %v1515_v19, %v1857_v53  ;;  %v946_v24 = vadd.f32 %v1563_v20, %v1857_v53 }
  0xff   : > { %v1517_v27 = vpop.f32.mrf.mxu0  ;;  %v1565_v28 = vpop.f32.mrf.mxu1 }
 0x100   : > { %v962_v29 = vmax.f32 %v930_v23, 0.0  ;;  %v978_v30 = vmax.f32 %v946_v24, 0.0  ;;  %v1518_v31 = vadd.f32 %v1517_v27, %v1516_v21  ;;  %v1566_v32 = vadd.f32 %v1565_v28, %v1564_v22 }
 0x101   : > { %v1519_v33 = vpop.f32.mrf.mxu0  ;;  %v1567_v34 = vpop.f32.mrf.mxu1 }
 0x102   : > { %v1401_v35 = vpack.c.bf16 %v962_v29, %v961_v25  ;;  %v1441_v36 = vpack.c.bf16 %v978_v30, %v977_v26  ;;  %v931_v37 = vadd.f32 %v1518_v31, %v1857_v53  ;;  %v947_v38 = vadd.f32 %v1566_v32, %v1857_v53 }
 0x103   : > { %v1520_v39 = vpop.f32.mrf.mxu0  ;;  %v1568_v40 = vpop.f32.mrf.mxu1 }
 0x104   : > { %1473 = vst [vmem:[%s1867_s8 + $0x8] sm:$0xff] %v1401_v35   ;;  %1481 = vst [vmem:[%s1867_s8 + $0x48] sm:$0xff] %v1441_v36   ;;  %v1521_v41 = vadd.f32 %v1520_v39, %v1519_v33  ;;  %v1569_v42 = vadd.f32 %v1568_v40, %v1567_v34  ;;  %v963_v47 = vmax.f32 %v931_v37, 0.0  ;;  %v979_v48 = vmax.f32 %v947_v38, 0.0 }
 0x105   : > { %v1522_v43 = vpop.f32.mrf.mxu0  ;;  %v1570_v44 = vpop.f32.mrf.mxu1 }
 0x106   : > { %v932_v45 = vadd.f32 %v1521_v41, %v1857_v53  ;;  %v948_v46 = vadd.f32 %v1569_v42, %v1857_v53 }
 0x107   : > { %v1523_v49 = vpop.f32.mrf.mxu0  ;;  %v1571_v50 = vpop.f32.mrf.mxu1 }
 0x108   : > { %v964_v51 = vmax.f32 %v932_v45, 0.0  ;;  %v980_v52 = vmax.f32 %v948_v46, 0.0  ;;  %v1524_v54 = vadd.f32 %v1523_v49, %v1522_v43  ;;  %v1572_v55 = vadd.f32 %v1571_v50, %v1570_v44 }
 0x109   : > { %v1525_v56 = vpop.f32.mrf.mxu0  ;;  %v1573_v57 = vpop.f32.mrf.mxu1 }
 0x10a   : > { %v1406_v58 = vpack.c.bf16 %v964_v51, %v963_v47  ;;  %v1446_v59 = vpack.c.bf16 %v980_v52, %v979_v48  ;;  %v933_v60 = vadd.f32 %v1524_v54, %v1857_v53  ;;  %v949_v61 = vadd.f32 %v1572_v55, %v1857_v53 }
 0x10b   : > { %v1526_v62 = vpop.f32.mrf.mxu0  ;;  %v1574_v63 = vpop.f32.mrf.mxu1 }
 0x10c   : > { %1474 = vst [vmem:[%s1867_s8 + $0x10] sm:$0xff] %v1406_v58   ;;  %1482 = vst [vmem:[%s1867_s8 + $0x50] sm:$0xff] %v1446_v59   ;;  %v1527_v0 = vadd.f32 %v1526_v62, %v1525_v56  ;;  %v1575_v1 = vadd.f32 %v1574_v63, %v1573_v57  ;;  %v965_v6 = vmax.f32 %v933_v60, 0.0  ;;  %v981_v7 = vmax.f32 %v949_v61, 0.0 }
 0x10d   : > { %v1528_v2 = vpop.f32.mrf.mxu0  ;;  %v1576_v3 = vpop.f32.mrf.mxu1 }
 0x10e   : > { %v934_v4 = vadd.f32 %v1527_v0, %v1857_v53  ;;  %v950_v5 = vadd.f32 %v1575_v1, %v1857_v53 }
 0x10f   : > { %v1529_v8 = vpop.f32.mrf.mxu0  ;;  %v1577_v9 = vpop.f32.mrf.mxu1 }
 0x110   : > { %v966_v10 = vmax.f32 %v934_v4, 0.0  ;;  %v982_v11 = vmax.f32 %v950_v5, 0.0  ;;  %v1530_v12 = vadd.f32 %v1529_v8, %v1528_v2  ;;  %v1578_v13 = vadd.f32 %v1577_v9, %v1576_v3 }
 0x111   : > { %v1531_v14 = vpop.f32.mrf.mxu0  ;;  %v1579_v15 = vpop.f32.mrf.mxu1 }
 0x112   : > { %v1411_v16 = vpack.c.bf16 %v966_v10, %v965_v6  ;;  %v1451_v17 = vpack.c.bf16 %v982_v11, %v981_v7  ;;  %v935_v18 = vadd.f32 %v1530_v12, %v1857_v53  ;;  %v951_v19 = vadd.f32 %v1578_v13, %v1857_v53 }
 0x113   : > { %v1532_v20 = vpop.f32.mrf.mxu0  ;;  %v1580_v21 = vpop.f32.mrf.mxu1 }
 0x114   : > { %1475 = vst [vmem:[%s1867_s8 + $0x18] sm:$0xff] %v1411_v16   ;;  %1483 = vst [vmem:[%s1867_s8 + $0x58] sm:$0xff] %v1451_v17   ;;  %v1533_v22 = vadd.f32 %v1532_v20, %v1531_v14  ;;  %v1581_v23 = vadd.f32 %v1580_v21, %v1579_v15  ;;  %v967_v28 = vmax.f32 %v935_v18, 0.0  ;;  %v983_v29 = vmax.f32 %v951_v19, 0.0 }
 0x115   : > { %v1534_v24 = vpop.f32.mrf.mxu0  ;;  %v1582_v25 = vpop.f32.mrf.mxu1 }
 0x116   : > { %v936_v26 = vadd.f32 %v1533_v22, %v1857_v53  ;;  %v952_v27 = vadd.f32 %v1581_v23, %v1857_v53 }
 0x117   : > { %v1535_v30 = vpop.f32.mrf.mxu0  ;;  %v1583_v31 = vpop.f32.mrf.mxu1 }
 0x118   : > { %v968_v32 = vmax.f32 %v936_v26, 0.0  ;;  %v984_v33 = vmax.f32 %v952_v27, 0.0  ;;  %v1536_v34 = vadd.f32 %v1535_v30, %v1534_v24  ;;  %v1584_v35 = vadd.f32 %v1583_v31, %v1582_v25 }
 0x119   : > { %v1537_v36 = vpop.f32.mrf.mxu0  ;;  %v1585_v37 = vpop.f32.mrf.mxu1 }
 0x11a   : > { %v1416_v38 = vpack.c.bf16 %v968_v32, %v967_v28  ;;  %v1456_v39 = vpack.c.bf16 %v984_v33, %v983_v29  ;;  %v937_v40 = vadd.f32 %v1536_v34, %v1857_v53  ;;  %v953_v41 = vadd.f32 %v1584_v35, %v1857_v53 }
 0x11b   : > { %v1538_v42 = vpop.f32.mrf.mxu0  ;;  %v1586_v43 = vpop.f32.mrf.mxu1 }
 0x11c   : > { %1476 = vst [vmem:[%s1867_s8 + $0x20] sm:$0xff] %v1416_v38   ;;  %1484 = vst [vmem:[%s1867_s8 + $0x60] sm:$0xff] %v1456_v39   ;;  %v1539_v44 = vadd.f32 %v1538_v42, %v1537_v36  ;;  %v1587_v45 = vadd.f32 %v1586_v43, %v1585_v37  ;;  %v969_v50 = vmax.f32 %v937_v40, 0.0  ;;  %v985_v51 = vmax.f32 %v953_v41, 0.0 }
 0x11d   : > { %v1540_v46 = vpop.f32.mrf.mxu0  ;;  %v1588_v47 = vpop.f32.mrf.mxu1 }
 0x11e   : > { %v938_v48 = vadd.f32 %v1539_v44, %v1857_v53  ;;  %v954_v49 = vadd.f32 %v1587_v45, %v1857_v53 }
 0x11f   : > { %v1541_v52 = vpop.f32.mrf.mxu0  ;;  %v1589_v54 = vpop.f32.mrf.mxu1 }
 0x120   : > { %v970_v55 = vmax.f32 %v938_v48, 0.0  ;;  %v986_v56 = vmax.f32 %v954_v49, 0.0  ;;  %v1542_v57 = vadd.f32 %v1541_v52, %v1540_v46  ;;  %v1590_v58 = vadd.f32 %v1589_v54, %v1588_v47 }
 0x121   : > { %v1543_v59 = vpop.f32.mrf.mxu0  ;;  %v1591_v60 = vpop.f32.mrf.mxu1 }
 0x122   : > { %v1421_v61 = vpack.c.bf16 %v970_v55, %v969_v50  ;;  %v1461_v62 = vpack.c.bf16 %v986_v56, %v985_v51  ;;  %v939_v63 = vadd.f32 %v1542_v57, %v1857_v53  ;;  %v955_v0 = vadd.f32 %v1590_v58, %v1857_v53 }
 0x123   : > { %v1544_v1 = vpop.f32.mrf.mxu0  ;;  %v1592_v2 = vpop.f32.mrf.mxu1 }
 0x124   : > { %1477 = vst [vmem:[%s1867_s8 + $0x28] sm:$0xff] %v1421_v61   ;;  %1485 = vst [vmem:[%s1867_s8 + $0x68] sm:$0xff] %v1461_v62   ;;  %v1545_v3 = vadd.f32 %v1544_v1, %v1543_v59  ;;  %v1593_v4 = vadd.f32 %v1592_v2, %v1591_v60  ;;  %v971_v9 = vmax.f32 %v939_v63, 0.0  ;;  %v987_v10 = vmax.f32 %v955_v0, 0.0 }
 0x125   : > { %v1546_v5 = vpop.f32.mrf.mxu0  ;;  %v1594_v6 = vpop.f32.mrf.mxu1 }
 0x126   : > { %v940_v7 = vadd.f32 %v1545_v3, %v1857_v53  ;;  %v956_v8 = vadd.f32 %v1593_v4, %v1857_v53 }
 0x127   : > { %v1547_v11 = vpop.f32.mrf.mxu0  ;;  %v1595_v12 = vpop.f32.mrf.mxu1 }
 0x128   : > { %v972_v13 = vmax.f32 %v940_v7, 0.0  ;;  %v988_v14 = vmax.f32 %v956_v8, 0.0  ;;  %v1548_v15 = vadd.f32 %v1547_v11, %v1546_v5  ;;  %v1596_v16 = vadd.f32 %v1595_v12, %v1594_v6 }
 0x129   : > { %v1549_v17 = vpop.f32.mrf.mxu0  ;;  %v1597_v18 = vpop.f32.mrf.mxu1 }
 0x12a   : > { %v1426_v19 = vpack.c.bf16 %v972_v13, %v971_v9  ;;  %v1466_v20 = vpack.c.bf16 %v988_v14, %v987_v10  ;;  %v941_v23 = vadd.f32 %v1548_v15, %v1857_v53  ;;  %v957_v24 = vadd.f32 %v1596_v16, %v1857_v53 }
 0x12b   : > { %v1550_v21 = vpop.f32.mrf.mxu0  ;;  %v1598_v22 = vpop.f32.mrf.mxu1 }
 0x12c   : > { %1478 = vst [vmem:[%s1867_s8 + $0x30] sm:$0xff] %v1426_v19   ;;  %1486 = vst [vmem:[%s1867_s8 + $0x70] sm:$0xff] %v1466_v20   ;;  %v1551_v25 = vadd.f32 %v1550_v21, %v1549_v17  ;;  %v1599_v26 = vadd.f32 %v1598_v22, %v1597_v18  ;;  %v973_v29 = vmax.f32 %v941_v23, 0.0  ;;  %v989_v30 = vmax.f32 %v957_v24, 0.0 }
 0x12e   : > { %v942_v27 = vadd.f32 %v1551_v25, %v1857_v53  ;;  %v958_v28 = vadd.f32 %v1599_v26, %v1857_v53 }
 0x130   : > { %v974_v31 = vmax.f32 %v942_v27, 0.0  ;;  %v990_v32 = vmax.f32 %v958_v28, 0.0 }
 0x132   : > { %v1431_v33 = vpack.c.bf16 %v974_v31, %v973_v29  ;;  %v1471_v34 = vpack.c.bf16 %v990_v32, %v989_v30 }
 0x134   : > { %1479 = vst [vmem:[%s1867_s8 + $0x38] sm:$0xff] %v1431_v33   ;;  %1487 = vst [vmem:[%s1867_s8 + $0x78] sm:$0xff] %v1471_v34  }
 0x135 PF: > { %s13_s14 = sadd.s32 1, %s1726_s14   ;;  %s1926_s12 = smov %s1722_s13 }
 0x136   : > { %p10_p5 = scmp.ge.s32.totalorder %s13_s14, 4   ;;  %s1927_s13 = smov %s1929_s15 }
 0x138   :  { %12 = sbr.rel (!%p10_p5) target bundleno = 2 (0x2), region = 80 }

</bundles_post_ra>
